<compile_context>
chip_gen: v6e
topology: v6e:2x2x1
jax: 0.10.0
libtpu: 0.0.40
codegen_flags: <defaults>
</compile_context>

<pallas_src>
import jax
import jax.numpy as jnp
from jax.experimental import pallas as pl
from jax.experimental.pallas import tpu as pltpu

IN_C = 3
OUT_C = 128
KSIZE = 3


def _matmul_bias_relu_kernel(p_ref, w_ref, b_ref, o_ref):
    """p_ref: (1, TR, K)   im2col patch rows (K = 3*3*IN_C = 27)
       w_ref: (K, OC4)     fused upsample+transposed-conv weight (OC4 = 4*OUT_C)
       b_ref: (1, OC4)     bias (tiled for the 4 sub-pixel positions)
       o_ref: (1, TR, OC4) output rows
    """
    acc = jnp.dot(p_ref[0], w_ref[...], preferred_element_type=jnp.float32)
    o_ref[0] = jnp.maximum(acc + b_ref[...], 0.0).astype(o_ref.dtype)


def _pick_row_tile(total, target=512):
    """Largest divisor of `total` that is <= target and a multiple of 8."""
    if total <= target or total % 8 != 0:
        return total
    for t in range(min(target, total), 7, -8):
        if total % t == 0:
            return t
    return total


def fused_conv_pallas(patches, w_big, b_big):
    """patches: (N, R, K) f32; w_big: (K, OC4); b_big: (1, OC4) -> (N, R, OC4)."""
    N, R, K = patches.shape
    OC4 = w_big.shape[1]
    TR = _pick_row_tile(R)
    grid = (N, R // TR)

    flops = 2 * N * R * K * OC4
    bytes_accessed = 4 * (patches.size + w_big.size + b_big.size + N * R * OC4)

    return pl.pallas_call(
        _matmul_bias_relu_kernel,
        out_shape=jax.ShapeDtypeStruct((N, R, OC4), jnp.float32),
        grid_spec=pltpu.PrefetchScalarGridSpec(
            num_scalar_prefetch=0,
            grid=grid,
            in_specs=[
                pl.BlockSpec((1, TR, K), lambda n, t: (n, t, 0)),
                pl.BlockSpec((K, OC4), lambda n, t: (0, 0)),
                pl.BlockSpec((1, OC4), lambda n, t: (0, 0)),
            ],
            out_specs=pl.BlockSpec((1, TR, OC4), lambda n, t: (n, t, 0)),
        ),
        compiler_params=pltpu.CompilerParams(
            dimension_semantics=("parallel", "parallel")),
        cost_estimate=pl.CostEstimate(
            flops=flops, transcendentals=0, bytes_accessed=bytes_accessed),
    )(patches, w_big, b_big)


def _fold_upsample_into_weight(w_t):
    """w_t: (IN_C, OUT_C, 3, 3) ConvTranspose2d weight -> (27, 4*OUT_C).

    1) ConvTranspose2d(stride=1, pad=1) == direct conv with spatially flipped
       kernel, pad=1:  Wc[kh,kw,ic,oc] = w_t[ic,oc,2-kh,2-kw]
    2) Fold the nearest x2 upsample: for output sub-pixel (py,px), the three
       taps along each axis collapse onto a 3x3 window of the ORIGINAL grid:
         py=0:  row i-1 <- Wc[0],  row i   <- Wc[1]+Wc[2], row i+1 <- 0
         py=1:  row i-1 <- 0,      row i   <- Wc[0]+Wc[1], row i+1 <- Wc[2]
       (same for columns).  Stack the 4 sub-pixels on the output channel axis.
    """
    wc = jnp.transpose(w_t[:, :, ::-1, ::-1], (2, 3, 0, 1))  # (kh, kw, ic, oc)
    collapse = jnp.array([[[1, 0, 0], [0, 1, 1], [0, 0, 0]],
                          [[0, 0, 0], [1, 1, 0], [0, 0, 1]]], jnp.float32)
    # (a, b, c, py, px, oc): a/b index the 3x3 window on the original grid.
    wsub = jnp.einsum('pak,qbl,klco->abcpqo', collapse, collapse, wc)
    return wsub.reshape(KSIZE * KSIZE * IN_C, 4 * OUT_C)


def model_forward(x_nchw, w_t, bias):
    """x_nchw: (N, 3, H, W) -> (N, 128, 2H, 2W).  Matches:
       relu(ConvTranspose2d(3,128,k=3,p=1,s=1)(nearest_upsample_x2(x)))."""
    N, C, H, W = x_nchw.shape
    x = jnp.transpose(x_nchw, (0, 2, 3, 1))                    # NHWC, original grid
    x_pad = jnp.pad(x, ((0, 0), (1, 1), (1, 1), (0, 0)))
    # Host-side im2col on the ORIGINAL grid; channel order (a, b, c) matches w_big.
    patches = jnp.concatenate(
        [x_pad[:, a:a + H, b:b + W, :]
         for a in range(KSIZE) for b in range(KSIZE)],
        axis=-1).reshape(N, H * W, KSIZE * KSIZE * C)

    w_big = _fold_upsample_into_weight(w_t)                     # (27, 512)
    b_big = jnp.tile(bias, 4).reshape(1, 4 * OUT_C)             # (1, 512)

    y = fused_conv_pallas(patches, w_big, b_big)                # (N, H*W, 512)

    # depth-to-space (pixel shuffle) + NHWC->NCHW (required output layout):
    # (n, i, j, py, px, oc) -> (n, oc, 2i+py, 2j+px); fuses into one XLA transpose.
    y = y.reshape(N, H, W, 2, 2, OUT_C)
    y = jnp.transpose(y, (0, 5, 1, 3, 2, 4)).reshape(N, OUT_C, 2 * H, 2 * W)
    return y


if __name__ == "__main__":
    key = jax.random.PRNGKey(0)
    k_x, k_w, k_b = jax.random.split(key, 3)

    # Small shapes consistent with the module: N=2, C_in=3 (fixed), spatial=16.
    N, H, W = 2, 16, 16
    x1 = jax.random.normal(k_x, (N, IN_C, H, W), dtype=jnp.float32)

    # Deterministic ConvTranspose2d-style init (uniform in +-1/sqrt(fan_in)).
    fan_in = IN_C * KSIZE * KSIZE
    bound = 1.0 / (fan_in ** 0.5)
    w_t = jax.random.uniform(k_w, (IN_C, OUT_C, KSIZE, KSIZE),
                             minval=-bound, maxval=bound, dtype=jnp.float32)
    bias = jax.random.uniform(k_b, (OUT_C,),
                              minval=-bound, maxval=bound, dtype=jnp.float32)

    out = jax.block_until_ready(jax.jit(model_forward)(x1, w_t, bias))
    assert out.shape == (N, OUT_C, 2 * H, 2 * W), out.shape

    # Pure-JAX reference: explicit upsample -> flipped-kernel conv -> bias -> relu.
    x_nhwc = jnp.transpose(x1, (0, 2, 3, 1))
    x_up = jnp.repeat(jnp.repeat(x_nhwc, 2, axis=1), 2, axis=2)
    w_hwio = jnp.transpose(w_t[:, :, ::-1, ::-1], (2, 3, 0, 1))
    ref = jax.lax.conv_general_dilated(
        x_up, w_hwio, window_strides=(1, 1), padding=((1, 1), (1, 1)),
        dimension_numbers=("NHWC", "HWIO", "NHWC"),
        precision=jax.lax.Precision.HIGHEST)
    ref = jnp.maximum(ref + bias[None, None, None, :], 0.0)
    ref = jnp.transpose(ref, (0, 3, 1, 2))
    err = float(jnp.max(jnp.abs(out - ref)))
    assert jnp.allclose(out, ref, atol=1e-4, rtol=1e-4), err

    print("KERNEL_OK")
</pallas_src>

<mosaic_0001>
module attributes {stable_mosaic.version = 11 : i64} {
  func.func @_matmul_bias_relu_kernel(%arg0: i32, %arg1: i32, %arg2: memref<1x256x27xf32, #tpu.memory_space<vmem>>, %arg3: memref<27x512xf32, #tpu.memory_space<vmem>>, %arg4: memref<1x512xf32, #tpu.memory_space<vmem>>, %arg5: memref<1x256x512xf32, #tpu.memory_space<vmem>>) attributes {dimension_semantics = [#tpu.dimension_semantics<parallel>, #tpu.dimension_semantics<parallel>], iteration_bounds = array<i64: 2, 1>, scalar_prefetch = 0 : i64, scratch_operands = 0 : i64, tpu.core_type = #tpu.core_type<tc>, window_params = [{transform_indices = @transform_0, window_bounds = array<i64: 1, 256, 27>}, {pipeline_mode = #tpu.pipeline_mode<synchronous>, transform_indices = @transform_1, window_bounds = array<i64: 27, 512>}, {pipeline_mode = #tpu.pipeline_mode<synchronous>, transform_indices = @transform_2, window_bounds = array<i64: 1, 512>}, {transform_indices = @transform_3, window_bounds = array<i64: 1, 256, 512>}]} {
    %c0 = arith.constant 0 : index
    %c0_0 = arith.constant 0 : index
    %c0_1 = arith.constant 0 : index
    %0 = vector.load %arg2[%c0, %c0_0, %c0_1] : memref<1x256x27xf32, #tpu.memory_space<vmem>>, vector<1x256x27xf32>
    %1 = vector.shape_cast %0 : vector<1x256x27xf32> to vector<256x27xf32>
    %c0_2 = arith.constant 0 : index
    %c0_3 = arith.constant 0 : index
    %2 = vector.load %arg3[%c0_2, %c0_3] : memref<27x512xf32, #tpu.memory_space<vmem>>, vector<27x512xf32>
    %cst = arith.constant dense<0.000000e+00> : vector<256x512xf32>
    %3 = tpu.matmul %1, %2, %cst {dimension_numbers = #tpu.dot_dimension_numbers<[1], [0], [0], [1], [0, 0, 1, 1], [], []>} : vector<256x27xf32>, vector<27x512xf32>, vector<256x512xf32> -> vector<256x512xf32>
    %c0_4 = arith.constant 0 : index
    %c0_5 = arith.constant 0 : index
    %4 = vector.load %arg4[%c0_4, %c0_5] : memref<1x512xf32, #tpu.memory_space<vmem>>, vector<1x512xf32>
    %5 = vector.broadcast %4 : vector<1x512xf32> to vector<256x512xf32>
    %6 = arith.addf %3, %5 : vector<256x512xf32>
    %cst_6 = arith.constant 0.000000e+00 : f32
    %7 = vector.broadcast %cst_6 : f32 to vector<256x512xf32>
    %8 = arith.maximumf %6, %7 : vector<256x512xf32>
    %c0_7 = arith.constant 0 : index
    %c0_8 = arith.constant 0 : index
    %c0_9 = arith.constant 0 : index
    %9 = vector.load %arg5[%c0_7, %c0_8, %c0_9] : memref<1x256x512xf32, #tpu.memory_space<vmem>>, vector<1x256x512xf32>
    %10 = vector.shape_cast %9 : vector<1x256x512xf32> to vector<256x512xf32>
    %11 = vector.shape_cast %8 : vector<256x512xf32> to vector<1x256x512xf32>
    tpu.vector_store %arg5[%c0_7, %c0_8, %c0_9], %11 {strides = array<i32>} : memref<1x256x512xf32, #tpu.memory_space<vmem>>, vector<1x256x512xf32>,
    return
  }
  func.func @transform_0(%arg0: i32, %arg1: i32) -> (i32, i32, i32) {
    %c0_i32 = arith.constant 0 : i32
    %c0_i32_0 = arith.constant 0 : i32
    return %arg0, %arg1, %c0_i32 : i32, i32, i32
  }
  func.func @transform_1(%arg0: i32, %arg1: i32) -> (i32, i32) {
    %c0_i32 = arith.constant 0 : i32
    %c0_i32_0 = arith.constant 0 : i32
    %c0_i32_1 = arith.constant 0 : i32
    return %c0_i32, %c0_i32_0 : i32, i32
  }
  func.func @transform_2(%arg0: i32, %arg1: i32) -> (i32, i32) {
    %c0_i32 = arith.constant 0 : i32
    %c0_i32_0 = arith.constant 0 : i32
    %c0_i32_1 = arith.constant 0 : i32
    return %c0_i32, %c0_i32_0 : i32, i32
  }
  func.func @transform_3(%arg0: i32, %arg1: i32) -> (i32, i32, i32) {
    %c0_i32 = arith.constant 0 : i32
    %c0_i32_0 = arith.constant 0 : i32
    return %arg0, %arg1, %c0_i32 : i32, i32, i32
  }
}

</mosaic_0001>

<bundles_post_ra>
// kernel: tile.8
= control target key start
LH: loop header
LB: loop body
LE: loop exit
PB: predicated region body
PF: predicated region fallthrough
CT: control target
= control target key end

     0   :  { %s22_s0 = inlined_call_operand.vmem [shape: f32[128], index: 0, kind: input, shape index: {}]   ;;  %s23_s1 = inlined_call_operand.vmem [shape: f32[4,128], index: 1, kind: output, shape index: {}]  }
   0x1   :  { %v4_v0 = vld [vmem:[%s22_s0] ss:$0 sm:$0xff] }
   0x2   :  { %5 = vst [vmem:[%s23_s1] sm:$0xf] %v4_v0 }

// kernel: model_forward.1
= control target key start
LH: loop header
LB: loop body
LE: loop exit
PB: predicated region body
PF: predicated region fallthrough
CT: control target
= control target key end

     0   :  { %s1406_s12 = smov 0   ;;  %s1408_s13 = smov 0   ;;  %s1926_s0 = inlined_call_operand.vmem [shape: f32[2,256,27], index: 0, kind: input, shape index: {}]   ;;  %s1927_s1 = inlined_call_operand.vmem [shape: f32[27,512], index: 1, kind: input, shape index: {}]   ;;  %s1928_s2 = inlined_call_operand.vmem [shape: f32[1,512], index: 2, kind: input, shape index: {}]   ;;  %s1929_s3 = inlined_call_operand.vmem [shape: f32[2,256,512], index: 3, kind: output, shape index: {}]  }
   0x1   :  { %s1410_s14 = smov 0  }
   0x2 LB: > { %s25_s15 = sadd.s32 1, %s1379_s13  ;;  %p1259_p0 = scmp.ge.s32.totalorder %s1383_s14, 1  ;;  %s1383_s14 = sphi %s1410_s14, %s13_s14   ;;  %s1379_s13 = sphi %s1408_s13, %s1931_s13   ;;  %s1375_s12 = sphi %s1406_s12, %s1930_s12  }
   0x3   : > { %p27_p1 = scmp.ge.s32.totalorder %s25_s15, 2  ;;  %p158_p2 = scmp.lt.s32.totalorder %s1383_s14, 3 }
   0x5   : > { %s1933_s15 = smov (%p27_p1, %s25_s15), 0  ;;  %p159_p3 = pnand %p1259_p0, %p158_p2 }
   0x6   : > { %p192_p4 = scmp.lt.s32.totalorder (!%p159_p3), %s1375_s12, 1 }
   0x7   : > { %162 = sbr.rel (%p159_p3) target bundleno = 346 (0x15a), region = 32 }
   0xc   : > { %v257_v0 = vld [vmem:[%s1927_s1 + $0x68] sm:$0x7]  ;;  %vm379_vm0 = vcmask 1042432   ;;  %v259_v1 = vld [vmem:[%s1927_s1 + $0x78] sm:$0x7]  ;;  %v252_v6 = vld [vmem:[%s1927_s1 + $0x40] sm:$0xff]  ;;  %v262_v49 = vlaneseq }
   0xd   : > { %v253_v2 = vld [vmem:[%s1927_s1 + $0x48] sm:$0xff]  ;;  %1264 = vmatprep.subr.msk.mxu0 %vm379_vm0, %v257_v0  ;;  %1298 = vmatprep.subr.msk.mxu1 %vm379_vm0, %v259_v1  ;;  %v256_v3 = vld [vmem:[%s1927_s1 + $0x60] sm:$0x7]  ;;  %v258_v4 = vld [vmem:[%s1927_s1 + $0x70] sm:$0x7]  ;;  %s1935_s12 = smov (!%p192_p4, %s1375_s12), 1 }
   0xe   : > { %v255_v5 = vld [vmem:[%s1927_s1 + $0x58] sm:$0xff]  ;;  %1265 = vmatpush1.msk.msra.mxu0 %vm379_vm0, %v256_v3  ;;  %1299 = vmatpush1.msk.msra.mxu1 %vm379_vm0, %v258_v4  ;;  %v254_v7 = vld [vmem:[%s1927_s1 + $0x50] sm:$0xff]  ;;  %v249_v8 = vld [vmem:[%s1927_s1 + $0x28] sm:$0xff]  ;;  %s1334_s25 = sshll.u32 %s1935_s12, 8  ;;  %vm282_vm1 = vcmask 220160   ;;  %v1385_v16 = vmov 0.0  }
   0xf   : > { %418 = vmatprep.subr.mxu0 %v253_v2  ;;  %675 = vmatprep.subr.mxu1 %v255_v5  ;;  %v251_v9 = vld [vmem:[%s1927_s1 + $0x38] sm:$0xff]  ;;  %v248_v10 = vld [vmem:[%s1927_s1 + $0x20] sm:$0xff]  ;;  %v250_v11 = vld [vmem:[%s1927_s1 + $0x30] sm:$0xff]  ;;  %s1482_s28 = scalar_lea.vmem %s1926_s0, %s1334_s25  ;;  %v263_v50 = vshrl.u32 %v262_v49, 7  ;;  %s1335_s4 = sshll.u32 %s1935_s12, 10 }
  0x10   : > { %419 = vmatpush1.msra.mxu0 %v252_v6  ;;  %676 = vmatpush1.msra.mxu1 %v254_v7  ;;  %v245_v12 = vld [vmem:[%s1927_s1 + $0x8] sm:$0xff]  ;;  %v247_v13 = vld [vmem:[%s1927_s1 + $0x18] sm:$0xff]  ;;  %v244_v14 = vld [vmem:[%s1927_s1] sm:$0xff]  ;;  %s1661_s7 = scalar_lea.vmem %s1929_s3, %s1335_s4 }
  0x11   : > { %420 = vmatprep.subr.mxu0 %v249_v8  ;;  %677 = vmatprep.subr.mxu1 %v251_v9  ;;  %v246_v15 = vld [vmem:[%s1927_s1 + $0x10] sm:$0xff]  ;;  %v212_v17 = vld [vmem:[%s1482_s28] sm:$0xff]  ;;  %v213_v18 = vld [vmem:[%s1482_s28 + $0x8] sm:$0xff]  ;;  %v264_v51 = vsub.s32 0, %v263_v50  ;;  %v272_v52 = vsub.s32 2, %v263_v50  ;;  %v268_v54 = vsub.s32 1, %v263_v50 }
  0x12   : > { %421 = vmatpush1.msra.mxu0 %v248_v10  ;;  %678 = vmatpush1.msra.mxu1 %v250_v11  ;;  %v214_v19 = vld [vmem:[%s1482_s28 + $0x10] sm:$0xff]  ;;  %v215_v20 = vld [vmem:[%s1482_s28 + $0x18] sm:$0xff]  ;;  %v216_v21 = vld [vmem:[%s1482_s28 + $0x20] sm:$0xff]  ;;  %v276_v55 = vsub.s32 3, %v263_v50 }
  0x13   : > { %422 = vmatprep.subr.mxu0 %v245_v12  ;;  %679 = vmatprep.subr.mxu1 %v247_v13  ;;  %v217_v22 = vld [vmem:[%s1482_s28 + $0x28] sm:$0xff]  ;;  %v218_v23 = vld [vmem:[%s1482_s28 + $0x30] sm:$0xff]  ;;  %v219_v24 = vld [vmem:[%s1482_s28 + $0x38] sm:$0xff] }
  0x14   : > { %423 = vmatpush1.msra.mxu0 %v244_v14  ;;  %456 = vmatprep.mubr.f32.mxu0 %v1385_v16  ;;  %v220_v25 = vld [vmem:[%s1482_s28 + $0x40] sm:$0xff]  ;;  %v221_v26 = vld [vmem:[%s1482_s28 + $0x48] sm:$0xff]  ;;  %v222_v27 = vld [vmem:[%s1482_s28 + $0x50] sm:$0xff] }
  0x15   : > { %680 = vmatpush1.msra.mxu1 %v246_v15  ;;  %713 = vmatprep.mubr.f32.mxu1 %v1385_v16  ;;  %v223_v28 = vld [vmem:[%s1482_s28 + $0x58] sm:$0xff]  ;;  %v224_v29 = vld [vmem:[%s1482_s28 + $0x60] sm:$0xff]  ;;  %v225_v30 = vld [vmem:[%s1482_s28 + $0x68] sm:$0xff] }
  0x16   : > { %1266 = vmatmul.mubr.msk.f32.vlgmr.msra.gmra.mxu0 %vm282_vm1, %v212_v17  ;;  %1300 = vmatmul.mubr.msk.f32.vlgmr.msra.gmra.mxu1 %vm282_vm1, %v212_v17  ;;  %v226_v31 = vld [vmem:[%s1482_s28 + $0x70] sm:$0xff]  ;;  %v227_v32 = vld [vmem:[%s1482_s28 + $0x78] sm:$0xff]  ;;  %v228_v33 = vld [vmem:[%s1482_s28 + $0x80] sm:$0xff] }
  0x17   : > { %462 = vmatprep.mubr.f32.mxu0 %v1385_v16  ;;  %719 = vmatprep.mubr.f32.mxu1 %v1385_v16  ;;  %v229_v34 = vld [vmem:[%s1482_s28 + $0x88] sm:$0xff]  ;;  %v230_v35 = vld [vmem:[%s1482_s28 + $0x90] sm:$0xff]  ;;  %v231_v36 = vld [vmem:[%s1482_s28 + $0x98] sm:$0xff] }
  0x18   : > { %v232_v37 = vld [vmem:[%s1482_s28 + $0xa0] sm:$0xff]  ;;  %v233_v38 = vld [vmem:[%s1482_s28 + $0xa8] sm:$0xff]  ;;  %v234_v39 = vld [vmem:[%s1482_s28 + $0xb0] sm:$0xff] }
  0x19   : > { %v235_v40 = vld [vmem:[%s1482_s28 + $0xb8] sm:$0xff]  ;;  %v236_v41 = vld [vmem:[%s1482_s28 + $0xc0] sm:$0xff]  ;;  %v237_v42 = vld [vmem:[%s1482_s28 + $0xc8] sm:$0xff] }
  0x1a   : > { %1267 = vmatmul.mubr.msk.f32.gmra.mxu0 %vm282_vm1, %v213_v18  ;;  %1301 = vmatmul.mubr.msk.f32.gmra.mxu1 %vm282_vm1, %v213_v18  ;;  %v238_v43 = vld [vmem:[%s1482_s28 + $0xd0] sm:$0xff]  ;;  %v239_v44 = vld [vmem:[%s1482_s28 + $0xd8] sm:$0xff]  ;;  %v240_v45 = vld [vmem:[%s1482_s28 + $0xe0] sm:$0xff] }
  0x1b   : > { %468 = vmatprep.mubr.f32.mxu0 %v1385_v16  ;;  %725 = vmatprep.mubr.f32.mxu1 %v1385_v16  ;;  %v241_v46 = vld [vmem:[%s1482_s28 + $0xe8] sm:$0xff]  ;;  %v242_v47 = vld [vmem:[%s1482_s28 + $0xf0] sm:$0xff]  ;;  %v243_v48 = vld [vmem:[%s1482_s28 + $0xf8] sm:$0xff] }
  0x1c   : > { %v260_v53 = vld [vmem:[%s1928_s2] sm:$0xf] }
  0x1d   : > { %v1647_v56 = vrot.slane %v260_v53, %v264_v51  ;;  %v1649_v57 = vrot.slane %v260_v53, %v272_v52  ;;  %v1652_v58 = vrot.slane %v260_v53, %v268_v54  ;;  %v1654_v59 = vrot.slane %v260_v53, %v276_v55 }
  0x1e   : > { %1268 = vmatmul.mubr.msk.f32.gmra.mxu0 %vm282_vm1, %v214_v19  ;;  %1302 = vmatmul.mubr.msk.f32.gmra.mxu1 %vm282_vm1, %v214_v19 }
  0x1f   : > { %474 = vmatprep.mubr.f32.mxu0 %v1385_v16  ;;  %731 = vmatprep.mubr.f32.mxu1 %v1385_v16 }
  0x22   : > { %1269 = vmatmul.mubr.msk.f32.gmra.mxu0 %vm282_vm1, %v215_v20  ;;  %1303 = vmatmul.mubr.msk.f32.gmra.mxu1 %vm282_vm1, %v215_v20 }
  0x23   : > { %480 = vmatprep.mubr.f32.mxu0 %v1385_v16  ;;  %737 = vmatprep.mubr.f32.mxu1 %v1385_v16 }
  0x26   : > { %1270 = vmatmul.mubr.msk.f32.gmra.mxu0 %vm282_vm1, %v216_v21  ;;  %1304 = vmatmul.mubr.msk.f32.gmra.mxu1 %vm282_vm1, %v216_v21 }
  0x27   : > { %486 = vmatprep.mubr.f32.mxu0 %v1385_v16  ;;  %743 = vmatprep.mubr.f32.mxu1 %v1385_v16 }
  0x2a   : > { %1271 = vmatmul.mubr.msk.f32.gmra.mxu0 %vm282_vm1, %v217_v22  ;;  %1305 = vmatmul.mubr.msk.f32.gmra.mxu1 %vm282_vm1, %v217_v22 }
  0x2b   : > { %492 = vmatprep.mubr.f32.mxu0 %v1385_v16  ;;  %749 = vmatprep.mubr.f32.mxu1 %v1385_v16 }
  0x2e   : > { %1272 = vmatmul.mubr.msk.f32.gmra.mxu0 %vm282_vm1, %v218_v23  ;;  %1306 = vmatmul.mubr.msk.f32.gmra.mxu1 %vm282_vm1, %v218_v23 }
  0x2f   : > { %498 = vmatprep.mubr.f32.mxu0 %v1385_v16  ;;  %755 = vmatprep.mubr.f32.mxu1 %v1385_v16 }
  0x32   : > { %1273 = vmatmul.mubr.msk.f32.gmra.mxu0 %vm282_vm1, %v219_v24  ;;  %1307 = vmatmul.mubr.msk.f32.gmra.mxu1 %vm282_vm1, %v219_v24 }
  0x33   : > { %504 = vmatprep.mubr.f32.mxu0 %v1385_v16  ;;  %761 = vmatprep.mubr.f32.mxu1 %v1385_v16 }
  0x36   : > { %1274 = vmatmul.mubr.msk.f32.gmra.mxu0 %vm282_vm1, %v220_v25  ;;  %1308 = vmatmul.mubr.msk.f32.gmra.mxu1 %vm282_vm1, %v220_v25 }
  0x37   : > { %510 = vmatprep.mubr.f32.mxu0 %v1385_v16  ;;  %767 = vmatprep.mubr.f32.mxu1 %v1385_v16 }
  0x3a   : > { %1275 = vmatmul.mubr.msk.f32.gmra.mxu0 %vm282_vm1, %v221_v26  ;;  %1309 = vmatmul.mubr.msk.f32.gmra.mxu1 %vm282_vm1, %v221_v26 }
  0x3b   : > { %516 = vmatprep.mubr.f32.mxu0 %v1385_v16  ;;  %773 = vmatprep.mubr.f32.mxu1 %v1385_v16 }
  0x3e   : > { %1276 = vmatmul.mubr.msk.f32.gmra.mxu0 %vm282_vm1, %v222_v27  ;;  %1310 = vmatmul.mubr.msk.f32.gmra.mxu1 %vm282_vm1, %v222_v27 }
  0x3f   : > { %522 = vmatprep.mubr.f32.mxu0 %v1385_v16  ;;  %779 = vmatprep.mubr.f32.mxu1 %v1385_v16 }
  0x42   : > { %1277 = vmatmul.mubr.msk.f32.gmra.mxu0 %vm282_vm1, %v223_v28  ;;  %1311 = vmatmul.mubr.msk.f32.gmra.mxu1 %vm282_vm1, %v223_v28 }
  0x43   : > { %528 = vmatprep.mubr.f32.mxu0 %v1385_v16  ;;  %785 = vmatprep.mubr.f32.mxu1 %v1385_v16 }
  0x46   : > { %1278 = vmatmul.mubr.msk.f32.gmra.mxu0 %vm282_vm1, %v224_v29  ;;  %1312 = vmatmul.mubr.msk.f32.gmra.mxu1 %vm282_vm1, %v224_v29 }
  0x47   : > { %534 = vmatprep.mubr.f32.mxu0 %v1385_v16  ;;  %791 = vmatprep.mubr.f32.mxu1 %v1385_v16 }
  0x4a   : > { %1279 = vmatmul.mubr.msk.f32.gmra.mxu0 %vm282_vm1, %v225_v30  ;;  %1313 = vmatmul.mubr.msk.f32.gmra.mxu1 %vm282_vm1, %v225_v30 }
  0x4b   : > { %540 = vmatprep.mubr.f32.mxu0 %v1385_v16  ;;  %797 = vmatprep.mubr.f32.mxu1 %v1385_v16 }
  0x4e   : > { %1280 = vmatmul.mubr.msk.f32.gmra.mxu0 %vm282_vm1, %v226_v31  ;;  %1314 = vmatmul.mubr.msk.f32.gmra.mxu1 %vm282_vm1, %v226_v31 }
  0x4f   : > { %546 = vmatprep.mubr.f32.mxu0 %v1385_v16  ;;  %803 = vmatprep.mubr.f32.mxu1 %v1385_v16 }
  0x52   : > { %1281 = vmatmul.mubr.msk.f32.gmra.mxu0 %vm282_vm1, %v227_v32  ;;  %1315 = vmatmul.mubr.msk.f32.gmra.mxu1 %vm282_vm1, %v227_v32 }
  0x53   : > { %552 = vmatprep.mubr.f32.mxu0 %v1385_v16  ;;  %809 = vmatprep.mubr.f32.mxu1 %v1385_v16 }
  0x56   : > { %1282 = vmatmul.mubr.msk.f32.gmra.mxu0 %vm282_vm1, %v228_v33  ;;  %1316 = vmatmul.mubr.msk.f32.gmra.mxu1 %vm282_vm1, %v228_v33 }
  0x57   : > { %558 = vmatprep.mubr.f32.mxu0 %v1385_v16  ;;  %815 = vmatprep.mubr.f32.mxu1 %v1385_v16 }
  0x5a   : > { %1283 = vmatmul.mubr.msk.f32.gmra.mxu0 %vm282_vm1, %v229_v34  ;;  %1317 = vmatmul.mubr.msk.f32.gmra.mxu1 %vm282_vm1, %v229_v34 }
  0x5b   : > { %564 = vmatprep.mubr.f32.mxu0 %v1385_v16  ;;  %821 = vmatprep.mubr.f32.mxu1 %v1385_v16 }
  0x5e   : > { %1284 = vmatmul.mubr.msk.f32.gmra.mxu0 %vm282_vm1, %v230_v35  ;;  %1318 = vmatmul.mubr.msk.f32.gmra.mxu1 %vm282_vm1, %v230_v35 }
  0x5f   : > { %570 = vmatprep.mubr.f32.mxu0 %v1385_v16  ;;  %827 = vmatprep.mubr.f32.mxu1 %v1385_v16 }
  0x62   : > { %1285 = vmatmul.mubr.msk.f32.gmra.mxu0 %vm282_vm1, %v231_v36  ;;  %1319 = vmatmul.mubr.msk.f32.gmra.mxu1 %vm282_vm1, %v231_v36 }
  0x63   : > { %576 = vmatprep.mubr.f32.mxu0 %v1385_v16  ;;  %833 = vmatprep.mubr.f32.mxu1 %v1385_v16 }
  0x66   : > { %1286 = vmatmul.mubr.msk.f32.gmra.mxu0 %vm282_vm1, %v232_v37  ;;  %1320 = vmatmul.mubr.msk.f32.gmra.mxu1 %vm282_vm1, %v232_v37 }
  0x67   : > { %582 = vmatprep.mubr.f32.mxu0 %v1385_v16  ;;  %839 = vmatprep.mubr.f32.mxu1 %v1385_v16 }
  0x6a   : > { %1287 = vmatmul.mubr.msk.f32.gmra.mxu0 %vm282_vm1, %v233_v38  ;;  %1321 = vmatmul.mubr.msk.f32.gmra.mxu1 %vm282_vm1, %v233_v38 }
  0x6b   : > { %588 = vmatprep.mubr.f32.mxu0 %v1385_v16  ;;  %845 = vmatprep.mubr.f32.mxu1 %v1385_v16 }
  0x6e   : > { %1288 = vmatmul.mubr.msk.f32.gmra.mxu0 %vm282_vm1, %v234_v39  ;;  %1322 = vmatmul.mubr.msk.f32.gmra.mxu1 %vm282_vm1, %v234_v39 }
  0x6f   : > { %594 = vmatprep.mubr.f32.mxu0 %v1385_v16  ;;  %851 = vmatprep.mubr.f32.mxu1 %v1385_v16 }
  0x72   : > { %1289 = vmatmul.mubr.msk.f32.gmra.mxu0 %vm282_vm1, %v235_v40  ;;  %1323 = vmatmul.mubr.msk.f32.gmra.mxu1 %vm282_vm1, %v235_v40 }
  0x73   : > { %600 = vmatprep.mubr.f32.mxu0 %v1385_v16  ;;  %857 = vmatprep.mubr.f32.mxu1 %v1385_v16 }
  0x76   : > { %1290 = vmatmul.mubr.msk.f32.gmra.mxu0 %vm282_vm1, %v236_v41  ;;  %1324 = vmatmul.mubr.msk.f32.gmra.mxu1 %vm282_vm1, %v236_v41 }
  0x77   : > { %606 = vmatprep.mubr.f32.mxu0 %v1385_v16  ;;  %863 = vmatprep.mubr.f32.mxu1 %v1385_v16 }
  0x7a   : > { %1291 = vmatmul.mubr.msk.f32.gmra.mxu0 %vm282_vm1, %v237_v42  ;;  %1325 = vmatmul.mubr.msk.f32.gmra.mxu1 %vm282_vm1, %v237_v42 }
  0x7b   : > { %612 = vmatprep.mubr.f32.mxu0 %v1385_v16  ;;  %869 = vmatprep.mubr.f32.mxu1 %v1385_v16 }
  0x7e   : > { %1292 = vmatmul.mubr.msk.f32.gmra.mxu0 %vm282_vm1, %v238_v43  ;;  %1326 = vmatmul.mubr.msk.f32.gmra.mxu1 %vm282_vm1, %v238_v43 }
  0x7f   : > { %618 = vmatprep.mubr.f32.mxu0 %v1385_v16  ;;  %875 = vmatprep.mubr.f32.mxu1 %v1385_v16 }
  0x82   : > { %1293 = vmatmul.mubr.msk.f32.gmra.mxu0 %vm282_vm1, %v239_v44  ;;  %1327 = vmatmul.mubr.msk.f32.gmra.mxu1 %vm282_vm1, %v239_v44 }
  0x83   : > { %624 = vmatprep.mubr.f32.mxu0 %v1385_v16  ;;  %881 = vmatprep.mubr.f32.mxu1 %v1385_v16 }
  0x86   : > { %1294 = vmatmul.mubr.msk.f32.gmra.mxu0 %vm282_vm1, %v240_v45  ;;  %1328 = vmatmul.mubr.msk.f32.gmra.mxu1 %vm282_vm1, %v240_v45 }
  0x87   : > { %630 = vmatprep.mubr.f32.mxu0 %v1385_v16  ;;  %887 = vmatprep.mubr.f32.mxu1 %v1385_v16 }
  0x8a   : > { %1295 = vmatmul.mubr.msk.f32.gmra.mxu0 %vm282_vm1, %v241_v46  ;;  %1329 = vmatmul.mubr.msk.f32.gmra.mxu1 %vm282_vm1, %v241_v46 }
  0x8b   : > { %636 = vmatprep.mubr.f32.mxu0 %v1385_v16  ;;  %893 = vmatprep.mubr.f32.mxu1 %v1385_v16 }
  0x8e   : > { %1296 = vmatmul.mubr.msk.f32.gmra.mxu0 %vm282_vm1, %v242_v47  ;;  %1330 = vmatmul.mubr.msk.f32.gmra.mxu1 %vm282_vm1, %v242_v47 }
  0x8f   : > { %642 = vmatprep.mubr.f32.mxu0 %v1385_v16  ;;  %899 = vmatprep.mubr.f32.mxu1 %v1385_v16 }
  0x92   : > { %1297 = vmatmul.mubr.msk.f32.gmra.mxu0 %vm282_vm1, %v243_v48  ;;  %1331 = vmatmul.mubr.msk.f32.gmra.mxu1 %vm282_vm1, %v243_v48 }
  0xd6   : > { %v458_v60 = vpop.f32.mrf.mxu0  ;;  %v715_v61 = vpop.f32.mrf.mxu1 }
  0xd7   : > { %v459_v62 = vadd.f32 %v458_v60, %v1647_v56  ;;  %v716_v63 = vadd.f32 %v715_v61, %v1649_v57 }
  0xd8   : > { %v460_v0 = vpop.f32.mrf.mxu0  ;;  %v717_v1 = vpop.f32.mrf.mxu1 }
  0xd9   : > { %v906_v2 = vmax.f32 %v459_v62, 0.0  ;;  %v908_v3 = vmax.f32 %v716_v63, 0.0  ;;  %v461_v4 = vadd.f32 %v460_v0, %v1652_v58  ;;  %v718_v5 = vadd.f32 %v717_v1, %v1654_v59 }
  0xda   : > { %v464_v6 = vpop.f32.mrf.mxu0  ;;  %v721_v7 = vpop.f32.mrf.mxu1 }
  0xdb   : > { %1034 = vst [vmem:[%s1661_s7] sm:$0xff] %v906_v2  ;;  %1036 = vst [vmem:[%s1661_s7 + $0x10] sm:$0xff] %v908_v3  ;;  %v907_v8 = vmax.f32 %v461_v4, 0.0  ;;  %v909_v9 = vmax.f32 %v718_v5, 0.0  ;;  %v465_v10 = vadd.f32 %v464_v6, %v1647_v56  ;;  %v722_v11 = vadd.f32 %v721_v7, %v1649_v57 }
  0xdc   : > { %v466_v12 = vpop.f32.mrf.mxu0  ;;  %v723_v13 = vpop.f32.mrf.mxu1 }
  0xdd   : > { %1035 = vst [vmem:[%s1661_s7 + $0x8] sm:$0xff] %v907_v8  ;;  %1037 = vst [vmem:[%s1661_s7 + $0x18] sm:$0xff] %v909_v9  ;;  %v910_v14 = vmax.f32 %v465_v10, 0.0  ;;  %v912_v15 = vmax.f32 %v722_v11, 0.0  ;;  %v467_v16 = vadd.f32 %v466_v12, %v1652_v58  ;;  %v724_v17 = vadd.f32 %v723_v13, %v1654_v59 }
  0xde   : > { %v470_v18 = vpop.f32.mrf.mxu0  ;;  %v727_v19 = vpop.f32.mrf.mxu1 }
  0xdf   : > { %1038 = vst [vmem:[%s1661_s7 + $0x20] sm:$0xff] %v910_v14  ;;  %1040 = vst [vmem:[%s1661_s7 + $0x30] sm:$0xff] %v912_v15  ;;  %v911_v20 = vmax.f32 %v467_v16, 0.0  ;;  %v913_v21 = vmax.f32 %v724_v17, 0.0  ;;  %v471_v22 = vadd.f32 %v470_v18, %v1647_v56  ;;  %v728_v23 = vadd.f32 %v727_v19, %v1649_v57 }
  0xe0   : > { %v472_v24 = vpop.f32.mrf.mxu0  ;;  %v729_v25 = vpop.f32.mrf.mxu1 }
  0xe1   : > { %1039 = vst [vmem:[%s1661_s7 + $0x28] sm:$0xff] %v911_v20  ;;  %1041 = vst [vmem:[%s1661_s7 + $0x38] sm:$0xff] %v913_v21  ;;  %v914_v26 = vmax.f32 %v471_v22, 0.0  ;;  %v916_v27 = vmax.f32 %v728_v23, 0.0  ;;  %v473_v28 = vadd.f32 %v472_v24, %v1652_v58  ;;  %v730_v29 = vadd.f32 %v729_v25, %v1654_v59 }
  0xe2   : > { %v476_v30 = vpop.f32.mrf.mxu0  ;;  %v733_v31 = vpop.f32.mrf.mxu1 }
  0xe3   : > { %1042 = vst [vmem:[%s1661_s7 + $0x40] sm:$0xff] %v914_v26  ;;  %1044 = vst [vmem:[%s1661_s7 + $0x50] sm:$0xff] %v916_v27  ;;  %v915_v32 = vmax.f32 %v473_v28, 0.0  ;;  %v917_v33 = vmax.f32 %v730_v29, 0.0  ;;  %v477_v34 = vadd.f32 %v476_v30, %v1647_v56  ;;  %v734_v35 = vadd.f32 %v733_v31, %v1649_v57 }
  0xe4   : > { %v478_v36 = vpop.f32.mrf.mxu0  ;;  %v735_v37 = vpop.f32.mrf.mxu1 }
  0xe5   : > { %1043 = vst [vmem:[%s1661_s7 + $0x48] sm:$0xff] %v915_v32  ;;  %1045 = vst [vmem:[%s1661_s7 + $0x58] sm:$0xff] %v917_v33  ;;  %v918_v38 = vmax.f32 %v477_v34, 0.0  ;;  %v920_v39 = vmax.f32 %v734_v35, 0.0  ;;  %v479_v40 = vadd.f32 %v478_v36, %v1652_v58  ;;  %v736_v41 = vadd.f32 %v735_v37, %v1654_v59 }
  0xe6   : > { %v482_v42 = vpop.f32.mrf.mxu0  ;;  %v739_v43 = vpop.f32.mrf.mxu1 }
  0xe7   : > { %1046 = vst [vmem:[%s1661_s7 + $0x60] sm:$0xff] %v918_v38  ;;  %1048 = vst [vmem:[%s1661_s7 + $0x70] sm:$0xff] %v920_v39  ;;  %v919_v44 = vmax.f32 %v479_v40, 0.0  ;;  %v921_v45 = vmax.f32 %v736_v41, 0.0  ;;  %v483_v46 = vadd.f32 %v482_v42, %v1647_v56  ;;  %v740_v47 = vadd.f32 %v739_v43, %v1649_v57 }
  0xe8   : > { %v484_v48 = vpop.f32.mrf.mxu0  ;;  %v741_v49 = vpop.f32.mrf.mxu1 }
  0xe9   : > { %1047 = vst [vmem:[%s1661_s7 + $0x68] sm:$0xff] %v919_v44  ;;  %1049 = vst [vmem:[%s1661_s7 + $0x78] sm:$0xff] %v921_v45  ;;  %v922_v50 = vmax.f32 %v483_v46, 0.0  ;;  %v924_v51 = vmax.f32 %v740_v47, 0.0  ;;  %v485_v52 = vadd.f32 %v484_v48, %v1652_v58  ;;  %v742_v53 = vadd.f32 %v741_v49, %v1654_v59 }
  0xea   : > { %v488_v54 = vpop.f32.mrf.mxu0  ;;  %v745_v55 = vpop.f32.mrf.mxu1 }
  0xeb   : > { %1050 = vst [vmem:[%s1661_s7 + $0x80] sm:$0xff] %v922_v50  ;;  %1052 = vst [vmem:[%s1661_s7 + $0x90] sm:$0xff] %v924_v51  ;;  %v923_v60 = vmax.f32 %v485_v52, 0.0  ;;  %v925_v61 = vmax.f32 %v742_v53, 0.0  ;;  %v489_v62 = vadd.f32 %v488_v54, %v1647_v56  ;;  %v746_v63 = vadd.f32 %v745_v55, %v1649_v57 }
  0xec   : > { %v490_v0 = vpop.f32.mrf.mxu0  ;;  %v747_v1 = vpop.f32.mrf.mxu1 }
  0xed   : > { %1051 = vst [vmem:[%s1661_s7 + $0x88] sm:$0xff] %v923_v60  ;;  %1053 = vst [vmem:[%s1661_s7 + $0x98] sm:$0xff] %v925_v61  ;;  %v926_v2 = vmax.f32 %v489_v62, 0.0  ;;  %v928_v3 = vmax.f32 %v746_v63, 0.0  ;;  %v491_v4 = vadd.f32 %v490_v0, %v1652_v58  ;;  %v748_v5 = vadd.f32 %v747_v1, %v1654_v59 }
  0xee   : > { %v494_v6 = vpop.f32.mrf.mxu0  ;;  %v751_v7 = vpop.f32.mrf.mxu1 }
  0xef   : > { %1054 = vst [vmem:[%s1661_s7 + $0xa0] sm:$0xff] %v926_v2  ;;  %1056 = vst [vmem:[%s1661_s7 + $0xb0] sm:$0xff] %v928_v3  ;;  %v927_v8 = vmax.f32 %v491_v4, 0.0  ;;  %v929_v9 = vmax.f32 %v748_v5, 0.0  ;;  %v495_v10 = vadd.f32 %v494_v6, %v1647_v56  ;;  %v752_v11 = vadd.f32 %v751_v7, %v1649_v57 }
  0xf0   : > { %v496_v12 = vpop.f32.mrf.mxu0  ;;  %v753_v13 = vpop.f32.mrf.mxu1 }
  0xf1   : > { %1055 = vst [vmem:[%s1661_s7 + $0xa8] sm:$0xff] %v927_v8  ;;  %1057 = vst [vmem:[%s1661_s7 + $0xb8] sm:$0xff] %v929_v9  ;;  %v930_v14 = vmax.f32 %v495_v10, 0.0  ;;  %v932_v15 = vmax.f32 %v752_v11, 0.0  ;;  %v497_v16 = vadd.f32 %v496_v12, %v1652_v58  ;;  %v754_v17 = vadd.f32 %v753_v13, %v1654_v59 }
  0xf2   : > { %v500_v18 = vpop.f32.mrf.mxu0  ;;  %v757_v19 = vpop.f32.mrf.mxu1 }
  0xf3   : > { %1058 = vst [vmem:[%s1661_s7 + $0xc0] sm:$0xff] %v930_v14  ;;  %1060 = vst [vmem:[%s1661_s7 + $0xd0] sm:$0xff] %v932_v15  ;;  %v931_v20 = vmax.f32 %v497_v16, 0.0  ;;  %v933_v21 = vmax.f32 %v754_v17, 0.0  ;;  %v501_v22 = vadd.f32 %v500_v18, %v1647_v56  ;;  %v758_v23 = vadd.f32 %v757_v19, %v1649_v57 }
  0xf4   : > { %v502_v24 = vpop.f32.mrf.mxu0  ;;  %v759_v25 = vpop.f32.mrf.mxu1 }
  0xf5   : > { %1059 = vst [vmem:[%s1661_s7 + $0xc8] sm:$0xff] %v931_v20  ;;  %1061 = vst [vmem:[%s1661_s7 + $0xd8] sm:$0xff] %v933_v21  ;;  %v934_v26 = vmax.f32 %v501_v22, 0.0  ;;  %v936_v27 = vmax.f32 %v758_v23, 0.0  ;;  %v503_v28 = vadd.f32 %v502_v24, %v1652_v58  ;;  %v760_v29 = vadd.f32 %v759_v25, %v1654_v59 }
  0xf6   : > { %v506_v30 = vpop.f32.mrf.mxu0  ;;  %v763_v31 = vpop.f32.mrf.mxu1 }
  0xf7   : > { %1062 = vst [vmem:[%s1661_s7 + $0xe0] sm:$0xff] %v934_v26  ;;  %1064 = vst [vmem:[%s1661_s7 + $0xf0] sm:$0xff] %v936_v27  ;;  %v935_v32 = vmax.f32 %v503_v28, 0.0  ;;  %v937_v33 = vmax.f32 %v760_v29, 0.0  ;;  %v507_v34 = vadd.f32 %v506_v30, %v1647_v56  ;;  %v764_v35 = vadd.f32 %v763_v31, %v1649_v57 }
  0xf8   : > { %v508_v36 = vpop.f32.mrf.mxu0  ;;  %v765_v37 = vpop.f32.mrf.mxu1 }
  0xf9   : > { %1063 = vst [vmem:[%s1661_s7 + $0xe8] sm:$0xff] %v935_v32  ;;  %1065 = vst [vmem:[%s1661_s7 + $0xf8] sm:$0xff] %v937_v33  ;;  %v938_v38 = vmax.f32 %v507_v34, 0.0  ;;  %v940_v39 = vmax.f32 %v764_v35, 0.0  ;;  %v509_v40 = vadd.f32 %v508_v36, %v1652_v58  ;;  %v766_v41 = vadd.f32 %v765_v37, %v1654_v59 }
  0xfa   : > { %v512_v42 = vpop.f32.mrf.mxu0  ;;  %v769_v43 = vpop.f32.mrf.mxu1 }
  0xfb   : > { %1066 = vst [vmem:[%s1661_s7 + $0x100] sm:$0xff] %v938_v38  ;;  %1068 = vst [vmem:[%s1661_s7 + $0x110] sm:$0xff] %v940_v39  ;;  %v939_v44 = vmax.f32 %v509_v40, 0.0  ;;  %v941_v45 = vmax.f32 %v766_v41, 0.0  ;;  %v513_v46 = vadd.f32 %v512_v42, %v1647_v56  ;;  %v770_v47 = vadd.f32 %v769_v43, %v1649_v57 }
  0xfc   : > { %v514_v48 = vpop.f32.mrf.mxu0  ;;  %v771_v49 = vpop.f32.mrf.mxu1 }
  0xfd   : > { %1067 = vst [vmem:[%s1661_s7 + $0x108] sm:$0xff] %v939_v44  ;;  %1069 = vst [vmem:[%s1661_s7 + $0x118] sm:$0xff] %v941_v45  ;;  %v942_v50 = vmax.f32 %v513_v46, 0.0  ;;  %v944_v51 = vmax.f32 %v770_v47, 0.0  ;;  %v515_v52 = vadd.f32 %v514_v48, %v1652_v58  ;;  %v772_v53 = vadd.f32 %v771_v49, %v1654_v59 }
  0xfe   : > { %v518_v54 = vpop.f32.mrf.mxu0  ;;  %v775_v55 = vpop.f32.mrf.mxu1 }
  0xff   : > { %1070 = vst [vmem:[%s1661_s7 + $0x120] sm:$0xff] %v942_v50  ;;  %1072 = vst [vmem:[%s1661_s7 + $0x130] sm:$0xff] %v944_v51  ;;  %v943_v60 = vmax.f32 %v515_v52, 0.0  ;;  %v945_v61 = vmax.f32 %v772_v53, 0.0  ;;  %v519_v62 = vadd.f32 %v518_v54, %v1647_v56  ;;  %v776_v63 = vadd.f32 %v775_v55, %v1649_v57 }
 0x100   : > { %v520_v0 = vpop.f32.mrf.mxu0  ;;  %v777_v1 = vpop.f32.mrf.mxu1 }
 0x101   : > { %1071 = vst [vmem:[%s1661_s7 + $0x128] sm:$0xff] %v943_v60  ;;  %1073 = vst [vmem:[%s1661_s7 + $0x138] sm:$0xff] %v945_v61  ;;  %v946_v2 = vmax.f32 %v519_v62, 0.0  ;;  %v948_v3 = vmax.f32 %v776_v63, 0.0  ;;  %v521_v4 = vadd.f32 %v520_v0, %v1652_v58  ;;  %v778_v5 = vadd.f32 %v777_v1, %v1654_v59 }
 0x102   : > { %v524_v6 = vpop.f32.mrf.mxu0  ;;  %v781_v7 = vpop.f32.mrf.mxu1 }
 0x103   : > { %1074 = vst [vmem:[%s1661_s7 + $0x140] sm:$0xff] %v946_v2  ;;  %1076 = vst [vmem:[%s1661_s7 + $0x150] sm:$0xff] %v948_v3  ;;  %v947_v8 = vmax.f32 %v521_v4, 0.0  ;;  %v949_v9 = vmax.f32 %v778_v5, 0.0  ;;  %v525_v10 = vadd.f32 %v524_v6, %v1647_v56  ;;  %v782_v11 = vadd.f32 %v781_v7, %v1649_v57 }
 0x104   : > { %v526_v12 = vpop.f32.mrf.mxu0  ;;  %v783_v13 = vpop.f32.mrf.mxu1 }
 0x105   : > { %1075 = vst [vmem:[%s1661_s7 + $0x148] sm:$0xff] %v947_v8  ;;  %1077 = vst [vmem:[%s1661_s7 + $0x158] sm:$0xff] %v949_v9  ;;  %v950_v14 = vmax.f32 %v525_v10, 0.0  ;;  %v952_v15 = vmax.f32 %v782_v11, 0.0  ;;  %v527_v16 = vadd.f32 %v526_v12, %v1652_v58  ;;  %v784_v17 = vadd.f32 %v783_v13, %v1654_v59 }
 0x106   : > { %v530_v18 = vpop.f32.mrf.mxu0  ;;  %v787_v19 = vpop.f32.mrf.mxu1 }
 0x107   : > { %1078 = vst [vmem:[%s1661_s7 + $0x160] sm:$0xff] %v950_v14  ;;  %1080 = vst [vmem:[%s1661_s7 + $0x170] sm:$0xff] %v952_v15  ;;  %v951_v20 = vmax.f32 %v527_v16, 0.0  ;;  %v953_v21 = vmax.f32 %v784_v17, 0.0  ;;  %v531_v22 = vadd.f32 %v530_v18, %v1647_v56  ;;  %v788_v23 = vadd.f32 %v787_v19, %v1649_v57 }
 0x108   : > { %v532_v24 = vpop.f32.mrf.mxu0  ;;  %v789_v25 = vpop.f32.mrf.mxu1 }
 0x109   : > { %1079 = vst [vmem:[%s1661_s7 + $0x168] sm:$0xff] %v951_v20  ;;  %1081 = vst [vmem:[%s1661_s7 + $0x178] sm:$0xff] %v953_v21  ;;  %v954_v26 = vmax.f32 %v531_v22, 0.0  ;;  %v956_v27 = vmax.f32 %v788_v23, 0.0  ;;  %v533_v28 = vadd.f32 %v532_v24, %v1652_v58  ;;  %v790_v29 = vadd.f32 %v789_v25, %v1654_v59 }
 0x10a   : > { %v536_v30 = vpop.f32.mrf.mxu0  ;;  %v793_v31 = vpop.f32.mrf.mxu1 }
 0x10b   : > { %1082 = vst [vmem:[%s1661_s7 + $0x180] sm:$0xff] %v954_v26  ;;  %1084 = vst [vmem:[%s1661_s7 + $0x190] sm:$0xff] %v956_v27  ;;  %v955_v32 = vmax.f32 %v533_v28, 0.0  ;;  %v957_v33 = vmax.f32 %v790_v29, 0.0  ;;  %v537_v34 = vadd.f32 %v536_v30, %v1647_v56  ;;  %v794_v35 = vadd.f32 %v793_v31, %v1649_v57 }
 0x10c   : > { %v538_v36 = vpop.f32.mrf.mxu0  ;;  %v795_v37 = vpop.f32.mrf.mxu1 }
 0x10d   : > { %1083 = vst [vmem:[%s1661_s7 + $0x188] sm:$0xff] %v955_v32  ;;  %1085 = vst [vmem:[%s1661_s7 + $0x198] sm:$0xff] %v957_v33  ;;  %v958_v38 = vmax.f32 %v537_v34, 0.0  ;;  %v960_v39 = vmax.f32 %v794_v35, 0.0  ;;  %v539_v40 = vadd.f32 %v538_v36, %v1652_v58  ;;  %v796_v41 = vadd.f32 %v795_v37, %v1654_v59 }
 0x10e   : > { %v542_v42 = vpop.f32.mrf.mxu0  ;;  %v799_v43 = vpop.f32.mrf.mxu1 }
 0x10f   : > { %1086 = vst [vmem:[%s1661_s7 + $0x1a0] sm:$0xff] %v958_v38  ;;  %1088 = vst [vmem:[%s1661_s7 + $0x1b0] sm:$0xff] %v960_v39  ;;  %v959_v44 = vmax.f32 %v539_v40, 0.0  ;;  %v961_v45 = vmax.f32 %v796_v41, 0.0  ;;  %v543_v46 = vadd.f32 %v542_v42, %v1647_v56  ;;  %v800_v47 = vadd.f32 %v799_v43, %v1649_v57 }
 0x110   : > { %v544_v48 = vpop.f32.mrf.mxu0  ;;  %v801_v49 = vpop.f32.mrf.mxu1 }
 0x111   : > { %1087 = vst [vmem:[%s1661_s7 + $0x1a8] sm:$0xff] %v959_v44  ;;  %1089 = vst [vmem:[%s1661_s7 + $0x1b8] sm:$0xff] %v961_v45  ;;  %v962_v50 = vmax.f32 %v543_v46, 0.0  ;;  %v964_v51 = vmax.f32 %v800_v47, 0.0  ;;  %v545_v52 = vadd.f32 %v544_v48, %v1652_v58  ;;  %v802_v53 = vadd.f32 %v801_v49, %v1654_v59 }
 0x112   : > { %v548_v54 = vpop.f32.mrf.mxu0  ;;  %v805_v55 = vpop.f32.mrf.mxu1 }
 0x113   : > { %1090 = vst [vmem:[%s1661_s7 + $0x1c0] sm:$0xff] %v962_v50  ;;  %1092 = vst [vmem:[%s1661_s7 + $0x1d0] sm:$0xff] %v964_v51  ;;  %v963_v60 = vmax.f32 %v545_v52, 0.0  ;;  %v965_v61 = vmax.f32 %v802_v53, 0.0  ;;  %v549_v62 = vadd.f32 %v548_v54, %v1647_v56  ;;  %v806_v63 = vadd.f32 %v805_v55, %v1649_v57 }
 0x114   : > { %v550_v0 = vpop.f32.mrf.mxu0  ;;  %v807_v1 = vpop.f32.mrf.mxu1 }
 0x115   : > { %1091 = vst [vmem:[%s1661_s7 + $0x1c8] sm:$0xff] %v963_v60  ;;  %1093 = vst [vmem:[%s1661_s7 + $0x1d8] sm:$0xff] %v965_v61  ;;  %v966_v2 = vmax.f32 %v549_v62, 0.0  ;;  %v968_v3 = vmax.f32 %v806_v63, 0.0  ;;  %v551_v4 = vadd.f32 %v550_v0, %v1652_v58  ;;  %v808_v5 = vadd.f32 %v807_v1, %v1654_v59 }
 0x116   : > { %v554_v6 = vpop.f32.mrf.mxu0  ;;  %v811_v7 = vpop.f32.mrf.mxu1 }
 0x117   : > { %1094 = vst [vmem:[%s1661_s7 + $0x1e0] sm:$0xff] %v966_v2  ;;  %1096 = vst [vmem:[%s1661_s7 + $0x1f0] sm:$0xff] %v968_v3  ;;  %v967_v8 = vmax.f32 %v551_v4, 0.0  ;;  %v969_v9 = vmax.f32 %v808_v5, 0.0  ;;  %v555_v10 = vadd.f32 %v554_v6, %v1647_v56  ;;  %v812_v11 = vadd.f32 %v811_v7, %v1649_v57 }
 0x118   : > { %v556_v12 = vpop.f32.mrf.mxu0  ;;  %v813_v13 = vpop.f32.mrf.mxu1 }
 0x119   : > { %1095 = vst [vmem:[%s1661_s7 + $0x1e8] sm:$0xff] %v967_v8  ;;  %1097 = vst [vmem:[%s1661_s7 + $0x1f8] sm:$0xff] %v969_v9  ;;  %v970_v14 = vmax.f32 %v555_v10, 0.0  ;;  %v972_v15 = vmax.f32 %v812_v11, 0.0  ;;  %v557_v16 = vadd.f32 %v556_v12, %v1652_v58  ;;  %v814_v17 = vadd.f32 %v813_v13, %v1654_v59 }
 0x11a   : > { %v560_v18 = vpop.f32.mrf.mxu0  ;;  %v817_v19 = vpop.f32.mrf.mxu1 }
 0x11b   : > { %1098 = vst [vmem:[%s1661_s7 + $0x200] sm:$0xff] %v970_v14  ;;  %1100 = vst [vmem:[%s1661_s7 + $0x210] sm:$0xff] %v972_v15  ;;  %v971_v20 = vmax.f32 %v557_v16, 0.0  ;;  %v973_v21 = vmax.f32 %v814_v17, 0.0  ;;  %v561_v22 = vadd.f32 %v560_v18, %v1647_v56  ;;  %v818_v23 = vadd.f32 %v817_v19, %v1649_v57 }
 0x11c   : > { %v562_v24 = vpop.f32.mrf.mxu0  ;;  %v819_v25 = vpop.f32.mrf.mxu1 }
 0x11d   : > { %1099 = vst [vmem:[%s1661_s7 + $0x208] sm:$0xff] %v971_v20  ;;  %1101 = vst [vmem:[%s1661_s7 + $0x218] sm:$0xff] %v973_v21  ;;  %v974_v26 = vmax.f32 %v561_v22, 0.0  ;;  %v976_v27 = vmax.f32 %v818_v23, 0.0  ;;  %v563_v28 = vadd.f32 %v562_v24, %v1652_v58  ;;  %v820_v29 = vadd.f32 %v819_v25, %v1654_v59 }
 0x11e   : > { %v566_v30 = vpop.f32.mrf.mxu0  ;;  %v823_v31 = vpop.f32.mrf.mxu1 }
 0x11f   : > { %1102 = vst [vmem:[%s1661_s7 + $0x220] sm:$0xff] %v974_v26  ;;  %1104 = vst [vmem:[%s1661_s7 + $0x230] sm:$0xff] %v976_v27  ;;  %v975_v32 = vmax.f32 %v563_v28, 0.0  ;;  %v977_v33 = vmax.f32 %v820_v29, 0.0  ;;  %v567_v34 = vadd.f32 %v566_v30, %v1647_v56  ;;  %v824_v35 = vadd.f32 %v823_v31, %v1649_v57 }
 0x120   : > { %v568_v36 = vpop.f32.mrf.mxu0  ;;  %v825_v37 = vpop.f32.mrf.mxu1 }
 0x121   : > { %1103 = vst [vmem:[%s1661_s7 + $0x228] sm:$0xff] %v975_v32  ;;  %1105 = vst [vmem:[%s1661_s7 + $0x238] sm:$0xff] %v977_v33  ;;  %v978_v38 = vmax.f32 %v567_v34, 0.0  ;;  %v980_v39 = vmax.f32 %v824_v35, 0.0  ;;  %v569_v40 = vadd.f32 %v568_v36, %v1652_v58  ;;  %v826_v41 = vadd.f32 %v825_v37, %v1654_v59 }
 0x122   : > { %v572_v42 = vpop.f32.mrf.mxu0  ;;  %v829_v43 = vpop.f32.mrf.mxu1 }
 0x123   : > { %1106 = vst [vmem:[%s1661_s7 + $0x240] sm:$0xff] %v978_v38  ;;  %1108 = vst [vmem:[%s1661_s7 + $0x250] sm:$0xff] %v980_v39  ;;  %v979_v44 = vmax.f32 %v569_v40, 0.0  ;;  %v981_v45 = vmax.f32 %v826_v41, 0.0  ;;  %v573_v46 = vadd.f32 %v572_v42, %v1647_v56  ;;  %v830_v47 = vadd.f32 %v829_v43, %v1649_v57 }
 0x124   : > { %v574_v48 = vpop.f32.mrf.mxu0  ;;  %v831_v49 = vpop.f32.mrf.mxu1 }
 0x125   : > { %1107 = vst [vmem:[%s1661_s7 + $0x248] sm:$0xff] %v979_v44  ;;  %1109 = vst [vmem:[%s1661_s7 + $0x258] sm:$0xff] %v981_v45  ;;  %v982_v50 = vmax.f32 %v573_v46, 0.0  ;;  %v984_v51 = vmax.f32 %v830_v47, 0.0  ;;  %v575_v52 = vadd.f32 %v574_v48, %v1652_v58  ;;  %v832_v53 = vadd.f32 %v831_v49, %v1654_v59 }
 0x126   : > { %v578_v54 = vpop.f32.mrf.mxu0  ;;  %v835_v55 = vpop.f32.mrf.mxu1 }
 0x127   : > { %1110 = vst [vmem:[%s1661_s7 + $0x260] sm:$0xff] %v982_v50  ;;  %1112 = vst [vmem:[%s1661_s7 + $0x270] sm:$0xff] %v984_v51  ;;  %v983_v60 = vmax.f32 %v575_v52, 0.0  ;;  %v985_v61 = vmax.f32 %v832_v53, 0.0  ;;  %v579_v62 = vadd.f32 %v578_v54, %v1647_v56  ;;  %v836_v63 = vadd.f32 %v835_v55, %v1649_v57 }
 0x128   : > { %v580_v0 = vpop.f32.mrf.mxu0  ;;  %v837_v1 = vpop.f32.mrf.mxu1 }
 0x129   : > { %1111 = vst [vmem:[%s1661_s7 + $0x268] sm:$0xff] %v983_v60  ;;  %1113 = vst [vmem:[%s1661_s7 + $0x278] sm:$0xff] %v985_v61  ;;  %v986_v2 = vmax.f32 %v579_v62, 0.0  ;;  %v988_v3 = vmax.f32 %v836_v63, 0.0  ;;  %v581_v4 = vadd.f32 %v580_v0, %v1652_v58  ;;  %v838_v5 = vadd.f32 %v837_v1, %v1654_v59 }
 0x12a   : > { %v584_v6 = vpop.f32.mrf.mxu0  ;;  %v841_v7 = vpop.f32.mrf.mxu1 }
 0x12b   : > { %1114 = vst [vmem:[%s1661_s7 + $0x280] sm:$0xff] %v986_v2  ;;  %1116 = vst [vmem:[%s1661_s7 + $0x290] sm:$0xff] %v988_v3  ;;  %v987_v8 = vmax.f32 %v581_v4, 0.0  ;;  %v989_v9 = vmax.f32 %v838_v5, 0.0  ;;  %v585_v10 = vadd.f32 %v584_v6, %v1647_v56  ;;  %v842_v11 = vadd.f32 %v841_v7, %v1649_v57 }
 0x12c   : > { %v586_v12 = vpop.f32.mrf.mxu0  ;;  %v843_v13 = vpop.f32.mrf.mxu1 }
 0x12d   : > { %1115 = vst [vmem:[%s1661_s7 + $0x288] sm:$0xff] %v987_v8  ;;  %1117 = vst [vmem:[%s1661_s7 + $0x298] sm:$0xff] %v989_v9  ;;  %v990_v14 = vmax.f32 %v585_v10, 0.0  ;;  %v992_v15 = vmax.f32 %v842_v11, 0.0  ;;  %v587_v16 = vadd.f32 %v586_v12, %v1652_v58  ;;  %v844_v17 = vadd.f32 %v843_v13, %v1654_v59 }
 0x12e   : > { %v590_v18 = vpop.f32.mrf.mxu0  ;;  %v847_v19 = vpop.f32.mrf.mxu1 }
 0x12f   : > { %1118 = vst [vmem:[%s1661_s7 + $0x2a0] sm:$0xff] %v990_v14  ;;  %1120 = vst [vmem:[%s1661_s7 + $0x2b0] sm:$0xff] %v992_v15  ;;  %v991_v20 = vmax.f32 %v587_v16, 0.0  ;;  %v993_v21 = vmax.f32 %v844_v17, 0.0  ;;  %v591_v22 = vadd.f32 %v590_v18, %v1647_v56  ;;  %v848_v23 = vadd.f32 %v847_v19, %v1649_v57 }
 0x130   : > { %v592_v24 = vpop.f32.mrf.mxu0  ;;  %v849_v25 = vpop.f32.mrf.mxu1 }
 0x131   : > { %1119 = vst [vmem:[%s1661_s7 + $0x2a8] sm:$0xff] %v991_v20  ;;  %1121 = vst [vmem:[%s1661_s7 + $0x2b8] sm:$0xff] %v993_v21  ;;  %v994_v26 = vmax.f32 %v591_v22, 0.0  ;;  %v996_v27 = vmax.f32 %v848_v23, 0.0  ;;  %v593_v28 = vadd.f32 %v592_v24, %v1652_v58  ;;  %v850_v29 = vadd.f32 %v849_v25, %v1654_v59 }
 0x132   : > { %v596_v30 = vpop.f32.mrf.mxu0  ;;  %v853_v31 = vpop.f32.mrf.mxu1 }
 0x133   : > { %1122 = vst [vmem:[%s1661_s7 + $0x2c0] sm:$0xff] %v994_v26  ;;  %1124 = vst [vmem:[%s1661_s7 + $0x2d0] sm:$0xff] %v996_v27  ;;  %v995_v32 = vmax.f32 %v593_v28, 0.0  ;;  %v997_v33 = vmax.f32 %v850_v29, 0.0  ;;  %v597_v34 = vadd.f32 %v596_v30, %v1647_v56  ;;  %v854_v35 = vadd.f32 %v853_v31, %v1649_v57 }
 0x134   : > { %v598_v36 = vpop.f32.mrf.mxu0  ;;  %v855_v37 = vpop.f32.mrf.mxu1 }
 0x135   : > { %1123 = vst [vmem:[%s1661_s7 + $0x2c8] sm:$0xff] %v995_v32  ;;  %1125 = vst [vmem:[%s1661_s7 + $0x2d8] sm:$0xff] %v997_v33  ;;  %v998_v38 = vmax.f32 %v597_v34, 0.0  ;;  %v1000_v39 = vmax.f32 %v854_v35, 0.0  ;;  %v599_v40 = vadd.f32 %v598_v36, %v1652_v58  ;;  %v856_v41 = vadd.f32 %v855_v37, %v1654_v59 }
 0x136   : > { %v602_v42 = vpop.f32.mrf.mxu0  ;;  %v859_v43 = vpop.f32.mrf.mxu1 }
 0x137   : > { %1126 = vst [vmem:[%s1661_s7 + $0x2e0] sm:$0xff] %v998_v38  ;;  %1128 = vst [vmem:[%s1661_s7 + $0x2f0] sm:$0xff] %v1000_v39  ;;  %v999_v44 = vmax.f32 %v599_v40, 0.0  ;;  %v1001_v45 = vmax.f32 %v856_v41, 0.0  ;;  %v603_v46 = vadd.f32 %v602_v42, %v1647_v56  ;;  %v860_v47 = vadd.f32 %v859_v43, %v1649_v57 }
 0x138   : > { %v604_v48 = vpop.f32.mrf.mxu0  ;;  %v861_v49 = vpop.f32.mrf.mxu1 }
 0x139   : > { %1127 = vst [vmem:[%s1661_s7 + $0x2e8] sm:$0xff] %v999_v44  ;;  %1129 = vst [vmem:[%s1661_s7 + $0x2f8] sm:$0xff] %v1001_v45  ;;  %v1002_v50 = vmax.f32 %v603_v46, 0.0  ;;  %v1004_v51 = vmax.f32 %v860_v47, 0.0  ;;  %v605_v52 = vadd.f32 %v604_v48, %v1652_v58  ;;  %v862_v53 = vadd.f32 %v861_v49, %v1654_v59 }
 0x13a   : > { %v608_v54 = vpop.f32.mrf.mxu0  ;;  %v865_v55 = vpop.f32.mrf.mxu1 }
 0x13b   : > { %1130 = vst [vmem:[%s1661_s7 + $0x300] sm:$0xff] %v1002_v50  ;;  %1132 = vst [vmem:[%s1661_s7 + $0x310] sm:$0xff] %v1004_v51  ;;  %v1003_v60 = vmax.f32 %v605_v52, 0.0  ;;  %v1005_v61 = vmax.f32 %v862_v53, 0.0  ;;  %v609_v62 = vadd.f32 %v608_v54, %v1647_v56  ;;  %v866_v63 = vadd.f32 %v865_v55, %v1649_v57 }
 0x13c   : > { %v610_v0 = vpop.f32.mrf.mxu0  ;;  %v867_v1 = vpop.f32.mrf.mxu1 }
 0x13d   : > { %1131 = vst [vmem:[%s1661_s7 + $0x308] sm:$0xff] %v1003_v60  ;;  %1133 = vst [vmem:[%s1661_s7 + $0x318] sm:$0xff] %v1005_v61  ;;  %v1006_v2 = vmax.f32 %v609_v62, 0.0  ;;  %v1008_v3 = vmax.f32 %v866_v63, 0.0  ;;  %v611_v4 = vadd.f32 %v610_v0, %v1652_v58  ;;  %v868_v5 = vadd.f32 %v867_v1, %v1654_v59 }
 0x13e   : > { %v614_v6 = vpop.f32.mrf.mxu0  ;;  %v871_v7 = vpop.f32.mrf.mxu1 }
 0x13f   : > { %1134 = vst [vmem:[%s1661_s7 + $0x320] sm:$0xff] %v1006_v2  ;;  %1136 = vst [vmem:[%s1661_s7 + $0x330] sm:$0xff] %v1008_v3  ;;  %v1007_v8 = vmax.f32 %v611_v4, 0.0  ;;  %v1009_v9 = vmax.f32 %v868_v5, 0.0  ;;  %v615_v10 = vadd.f32 %v614_v6, %v1647_v56  ;;  %v872_v11 = vadd.f32 %v871_v7, %v1649_v57 }
 0x140   : > { %v616_v12 = vpop.f32.mrf.mxu0  ;;  %v873_v13 = vpop.f32.mrf.mxu1 }
 0x141   : > { %1135 = vst [vmem:[%s1661_s7 + $0x328] sm:$0xff] %v1007_v8  ;;  %1137 = vst [vmem:[%s1661_s7 + $0x338] sm:$0xff] %v1009_v9  ;;  %v1010_v14 = vmax.f32 %v615_v10, 0.0  ;;  %v1012_v15 = vmax.f32 %v872_v11, 0.0  ;;  %v617_v16 = vadd.f32 %v616_v12, %v1652_v58  ;;  %v874_v17 = vadd.f32 %v873_v13, %v1654_v59 }
 0x142   : > { %v620_v18 = vpop.f32.mrf.mxu0  ;;  %v877_v19 = vpop.f32.mrf.mxu1 }
 0x143   : > { %1138 = vst [vmem:[%s1661_s7 + $0x340] sm:$0xff] %v1010_v14  ;;  %1140 = vst [vmem:[%s1661_s7 + $0x350] sm:$0xff] %v1012_v15  ;;  %v1011_v20 = vmax.f32 %v617_v16, 0.0  ;;  %v1013_v21 = vmax.f32 %v874_v17, 0.0  ;;  %v621_v22 = vadd.f32 %v620_v18, %v1647_v56  ;;  %v878_v23 = vadd.f32 %v877_v19, %v1649_v57 }
 0x144   : > { %v622_v24 = vpop.f32.mrf.mxu0  ;;  %v879_v25 = vpop.f32.mrf.mxu1 }
 0x145   : > { %1139 = vst [vmem:[%s1661_s7 + $0x348] sm:$0xff] %v1011_v20  ;;  %1141 = vst [vmem:[%s1661_s7 + $0x358] sm:$0xff] %v1013_v21  ;;  %v1014_v26 = vmax.f32 %v621_v22, 0.0  ;;  %v1016_v27 = vmax.f32 %v878_v23, 0.0  ;;  %v623_v28 = vadd.f32 %v622_v24, %v1652_v58  ;;  %v880_v29 = vadd.f32 %v879_v25, %v1654_v59 }
 0x146   : > { %v626_v30 = vpop.f32.mrf.mxu0  ;;  %v883_v31 = vpop.f32.mrf.mxu1 }
 0x147   : > { %1142 = vst [vmem:[%s1661_s7 + $0x360] sm:$0xff] %v1014_v26  ;;  %1144 = vst [vmem:[%s1661_s7 + $0x370] sm:$0xff] %v1016_v27  ;;  %v1015_v32 = vmax.f32 %v623_v28, 0.0  ;;  %v1017_v33 = vmax.f32 %v880_v29, 0.0  ;;  %v627_v34 = vadd.f32 %v626_v30, %v1647_v56  ;;  %v884_v35 = vadd.f32 %v883_v31, %v1649_v57 }
 0x148   : > { %v628_v36 = vpop.f32.mrf.mxu0  ;;  %v885_v37 = vpop.f32.mrf.mxu1 }
 0x149   : > { %1143 = vst [vmem:[%s1661_s7 + $0x368] sm:$0xff] %v1015_v32  ;;  %1145 = vst [vmem:[%s1661_s7 + $0x378] sm:$0xff] %v1017_v33  ;;  %v1018_v38 = vmax.f32 %v627_v34, 0.0  ;;  %v1020_v39 = vmax.f32 %v884_v35, 0.0  ;;  %v629_v40 = vadd.f32 %v628_v36, %v1652_v58  ;;  %v886_v41 = vadd.f32 %v885_v37, %v1654_v59 }
 0x14a   : > { %v632_v42 = vpop.f32.mrf.mxu0  ;;  %v889_v43 = vpop.f32.mrf.mxu1 }
 0x14b   : > { %1146 = vst [vmem:[%s1661_s7 + $0x380] sm:$0xff] %v1018_v38  ;;  %1148 = vst [vmem:[%s1661_s7 + $0x390] sm:$0xff] %v1020_v39  ;;  %v1019_v44 = vmax.f32 %v629_v40, 0.0  ;;  %v1021_v45 = vmax.f32 %v886_v41, 0.0  ;;  %v633_v46 = vadd.f32 %v632_v42, %v1647_v56  ;;  %v890_v47 = vadd.f32 %v889_v43, %v1649_v57 }
 0x14c   : > { %v634_v48 = vpop.f32.mrf.mxu0  ;;  %v891_v49 = vpop.f32.mrf.mxu1 }
 0x14d   : > { %1147 = vst [vmem:[%s1661_s7 + $0x388] sm:$0xff] %v1019_v44  ;;  %1149 = vst [vmem:[%s1661_s7 + $0x398] sm:$0xff] %v1021_v45  ;;  %v1022_v50 = vmax.f32 %v633_v46, 0.0  ;;  %v1024_v51 = vmax.f32 %v890_v47, 0.0  ;;  %v635_v52 = vadd.f32 %v634_v48, %v1652_v58  ;;  %v892_v53 = vadd.f32 %v891_v49, %v1654_v59 }
 0x14e   : > { %v638_v54 = vpop.f32.mrf.mxu0  ;;  %v895_v55 = vpop.f32.mrf.mxu1 }
 0x14f   : > { %1150 = vst [vmem:[%s1661_s7 + $0x3a0] sm:$0xff] %v1022_v50  ;;  %1152 = vst [vmem:[%s1661_s7 + $0x3b0] sm:$0xff] %v1024_v51  ;;  %v1023_v60 = vmax.f32 %v635_v52, 0.0  ;;  %v1025_v61 = vmax.f32 %v892_v53, 0.0  ;;  %v639_v62 = vadd.f32 %v638_v54, %v1647_v56  ;;  %v896_v63 = vadd.f32 %v895_v55, %v1649_v57 }
 0x150   : > { %v640_v0 = vpop.f32.mrf.mxu0  ;;  %v897_v1 = vpop.f32.mrf.mxu1 }
 0x151   : > { %1151 = vst [vmem:[%s1661_s7 + $0x3a8] sm:$0xff] %v1023_v60  ;;  %1153 = vst [vmem:[%s1661_s7 + $0x3b8] sm:$0xff] %v1025_v61  ;;  %v1026_v2 = vmax.f32 %v639_v62, 0.0  ;;  %v1028_v3 = vmax.f32 %v896_v63, 0.0  ;;  %v641_v4 = vadd.f32 %v640_v0, %v1652_v58  ;;  %v898_v5 = vadd.f32 %v897_v1, %v1654_v59 }
 0x152   : > { %v644_v6 = vpop.f32.mrf.mxu0  ;;  %v901_v7 = vpop.f32.mrf.mxu1 }
 0x153   : > { %1154 = vst [vmem:[%s1661_s7 + $0x3c0] sm:$0xff] %v1026_v2  ;;  %1156 = vst [vmem:[%s1661_s7 + $0x3d0] sm:$0xff] %v1028_v3  ;;  %v1027_v8 = vmax.f32 %v641_v4, 0.0  ;;  %v1029_v9 = vmax.f32 %v898_v5, 0.0  ;;  %v645_v10 = vadd.f32 %v644_v6, %v1647_v56  ;;  %v902_v11 = vadd.f32 %v901_v7, %v1649_v57 }
 0x154   : > { %v646_v12 = vpop.f32.mrf.mxu0  ;;  %v903_v13 = vpop.f32.mrf.mxu1 }
 0x155   : > { %1155 = vst [vmem:[%s1661_s7 + $0x3c8] sm:$0xff] %v1027_v8  ;;  %1157 = vst [vmem:[%s1661_s7 + $0x3d8] sm:$0xff] %v1029_v9  ;;  %v1030_v14 = vmax.f32 %v645_v10, 0.0  ;;  %v1032_v15 = vmax.f32 %v902_v11, 0.0  ;;  %v647_v16 = vadd.f32 %v646_v12, %v1652_v58  ;;  %v904_v17 = vadd.f32 %v903_v13, %v1654_v59 }
 0x157   : > { %1158 = vst [vmem:[%s1661_s7 + $0x3e0] sm:$0xff] %v1030_v14  ;;  %1160 = vst [vmem:[%s1661_s7 + $0x3f0] sm:$0xff] %v1032_v15  ;;  %v1031_v18 = vmax.f32 %v647_v16, 0.0  ;;  %v1033_v19 = vmax.f32 %v904_v17, 0.0 }
 0x159   : > { %1159 = vst [vmem:[%s1661_s7 + $0x3e8] sm:$0xff] %v1031_v18  ;;  %1161 = vst [vmem:[%s1661_s7 + $0x3f8] sm:$0xff] %v1033_v19 }
 0x15a PF: > { %s13_s14 = sadd.s32 1, %s1383_s14   ;;  %s1930_s12 = smov %s1379_s13 }
 0x15b   : > { %p10_p5 = scmp.ge.s32.totalorder %s13_s14, 4   ;;  %s1931_s13 = smov %s1933_s15 }
 0x15d   :  { %12 = sbr.rel (!%p10_p5) target bundleno = 2 (0x2), region = 62 }

</bundles_post_ra>
